<compile_context>
chip_gen: v7x
topology: tpu7x:2x2x1
jax: 0.10.0
libtpu: 0.0.40
codegen_flags: <defaults>
</compile_context>

<pallas_src>
import functools

import jax
import jax.numpy as jnp
from jax.experimental import pallas as pl
from jax.experimental.pallas import tpu as pltpu


def _round_up(x, m):
    return (x + m - 1) // m * m


def _vmem_capacity_bytes():
    """Per-core VMEM capacity; conservative fallback (v7x, 64 MiB) if query fails."""
    try:
        return int(pltpu.get_tpu_info().vmem_capacity_bytes)
    except Exception:  # pragma: no cover - defensive
        return 64 * 1024 * 1024


# ------------------------------- kernels ------------------------------------


def _ffn_resident_kernel(x_ref, w1_ref, b1_ref, w2_ref, b2_ref, o_ref):
    """Both weights resident in VMEM; one row tile per grid step."""
    h = jnp.dot(x_ref[...], w1_ref[...], preferred_element_type=jnp.float32)
    h = jnp.maximum(h + b1_ref[...].astype(jnp.float32), 0.0)  # bias+ReLU in f32
    # TODO(synk): training-mode dropout not implemented (eval-mode identity);
    # would use pltpu.prng_seed + pltpu.prng_random_bits per tile.
    y = jnp.dot(h.astype(w2_ref.dtype), w2_ref[...],
                preferred_element_type=jnp.float32)
    o_ref[...] = (y + b2_ref[...].astype(jnp.float32)).astype(o_ref.dtype)


def _ffn_streamed_kernel(x_ref, w1_ref, b1_ref, w2_ref, b2_ref, o_ref, acc_ref):
    """d_ff streamed in tf-chunks; f32 scratch accumulator over the k axis."""
    k = pl.program_id(1)

    @pl.when(k == 0)
    def _init():
        acc_ref[...] = jnp.zeros_like(acc_ref)

    h = jnp.dot(x_ref[...], w1_ref[...], preferred_element_type=jnp.float32)
    h = jnp.maximum(h + b1_ref[...].astype(jnp.float32), 0.0)
    # TODO(synk): training-mode dropout not implemented (eval-mode identity).
    acc_ref[...] += jnp.dot(h.astype(w2_ref.dtype), w2_ref[...],
                            preferred_element_type=jnp.float32)

    @pl.when(k == pl.num_programs(1) - 1)
    def _finalize():
        o_ref[...] = (acc_ref[...] + b2_ref[...].astype(jnp.float32)
                      ).astype(o_ref.dtype)


# --------------------------- parameter preparation --------------------------


def prepare_ffn_params(w1, b1, w2, b2, compute_dtype=None):
    """Pad (and optionally cast) FFN params ONCE, outside the per-call path.

    w1: [d_in, d_ff], b1: [d_ff], w2: [d_ff, d_in], b2: [d_in]
    (weights stored transposed vs torch.nn.Linear's [out, in] layout).

    Feature dims are zero-padded to multiples of 128 so every call sees
    lane-dense, (8,128)-aligned operands.  Padding is exact: padded x columns
    hit zero W1 rows, padded d_ff columns have zero bias and zero W2 rows,
    padded output columns are sliced off.  Pass compute_dtype=jnp.bfloat16 for
    the MXU bf16 fast path (biases stay f32; accumulation stays f32 in-kernel).
    """
    d_in, d_ff = w1.shape
    d_in_p = _round_up(d_in, 128)
    d_ff_p = _round_up(d_ff, 128)
    if compute_dtype is not None:
        w1 = w1.astype(compute_dtype)
        w2 = w2.astype(compute_dtype)
    w1_p = jnp.pad(w1, ((0, d_in_p - d_in), (0, d_ff_p - d_ff)))
    w2_p = jnp.pad(w2, ((0, d_ff_p - d_ff), (0, d_in_p - d_in)))
    b1_p = jnp.pad(b1.astype(jnp.float32), (0, d_ff_p - d_ff)).reshape(1, d_ff_p)
    b2_p = jnp.pad(b2.astype(jnp.float32), (0, d_in_p - d_in)).reshape(1, d_in_p)
    return w1_p, b1_p, w2_p, b2_p


# ------------------------------ VMEM budgeting -------------------------------


def _resident_vmem_bytes(tm, d_in_p, d_ff_p, x_item, w_item):
    weights = (2 * d_in_p * d_ff_p + 8 * d_ff_p + 8 * d_in_p) * w_item
    io = 2 * 2 * tm * d_in_p * x_item               # x + out tiles, 2 buffers each
    h = tm * d_ff_p * (4 + w_item)                  # f32 h + recast copy
    y = tm * d_in_p * 4
    return weights + io + h + y


def _streamed_vmem_bytes(tm, tf, d_in_p, x_item, w_item):
    wchunks = 2 * (2 * d_in_p * tf + 8 * tf + 8 * d_in_p) * w_item  # dbl-buffered
    io = 2 * 2 * tm * d_in_p * x_item
    h = tm * tf * (4 + w_item)
    acc = tm * d_in_p * 4
    return wchunks + io + h + acc


def _pick_tf(d_ff_p, target):
    """Largest multiple of 128 <= target that divides d_ff_p (>= 128)."""
    tf = max(128, min(target, d_ff_p) // 128 * 128)
    while d_ff_p % tf:
        tf -= 128
    return tf


# ------------------------------- main wrapper --------------------------------


@functools.partial(jax.jit, static_argnames=("tm", "tf", "force_streamed"))
def positionwise_feed_forward(x, w1_p, b1_p, w2_p, b2_p, *,
                              tm=256, tf=2048, force_streamed=False):
    """x: [bz, len_q, d_in] -> [bz, len_q, d_in] (eval-mode FFN).

    Weights must be pre-padded with prepare_ffn_params.  Compute dtype follows
    the (pre-padded) weight dtype; output dtype follows x.
    """
    bz, len_q, d_in = x.shape
    d_in_p, d_ff_p = w1_p.shape
    assert d_in <= d_in_p and w2_p.shape == (d_ff_p, d_in_p)
    M = bz * len_q

    out_dtype = x.dtype
    compute_dtype = w1_p.dtype
    x_item = jnp.dtype(compute_dtype).itemsize
    w_item = jnp.dtype(compute_dtype).itemsize

    capacity = _vmem_capacity_bytes()
    budget = capacity * 3 // 4                       # pipelining / Mosaic headroom

    # Row tile: MXU-sized by default; shrink only to reach >=2 grid rows and
    # never below 128 (MXU underfill + ~0.35us/step overhead), except tiny M.
    tm_eff = _round_up(max(8, min(tm, M)), 8)
    while tm_eff > 128 and pl.cdiv(M, tm_eff) < 2 and tm_eff // 2 >= 128:
        tm_eff = _round_up(tm_eff // 2, 8)

    use_resident = (not force_streamed) and (
        _resident_vmem_bytes(tm_eff, d_in_p, d_ff_p, x_item, w_item) <= budget)

    if not use_resident:
        tf_eff = _pick_tf(d_ff_p, tf)
        while (tf_eff > 128 and
               _streamed_vmem_bytes(tm_eff, tf_eff, d_in_p, x_item, w_item) > budget):
            tf_eff = _pick_tf(d_ff_p, max(128, tf_eff // 2))
        while (tm_eff > 64 and
               _streamed_vmem_bytes(tm_eff, tf_eff, d_in_p, x_item, w_item) > budget):
            tm_eff = _round_up(tm_eff // 2, 8)       # last resort (v7x, 64 MiB)

    M_pad = _round_up(M, tm_eff)
    n_rows = M_pad // tm_eff

    # Per-call work: pad activation rows only (weights already padded).
    x2d = jnp.pad(x.reshape(M, d_in).astype(compute_dtype),
                  ((0, M_pad - M), (0, d_in_p - d_in)))

    flops = 4 * M_pad * d_in_p * d_ff_p             # two matmuls
    weight_bytes = 2 * d_in_p * d_ff_p * w_item
    resident_spec = pl.Buffered(buffer_count=1)     # constant blocks: no dbl-buffer

    if use_resident:
        grid = (n_rows,)
        in_specs = [
            pl.BlockSpec((tm_eff, d_in_p), lambda i: (i, 0)),                 # x
            pl.BlockSpec((d_in_p, d_ff_p), lambda i: (0, 0),
                         pipeline_mode=resident_spec),                        # W1
            pl.BlockSpec((1, d_ff_p), lambda i: (0, 0),
                         pipeline_mode=resident_spec),                        # b1
            pl.BlockSpec((d_ff_p, d_in_p), lambda i: (0, 0),
                         pipeline_mode=resident_spec),                        # W2
            pl.BlockSpec((1, d_in_p), lambda i: (0, 0),
                         pipeline_mode=resident_spec),                        # b2
        ]
        out_specs = pl.BlockSpec((tm_eff, d_in_p), lambda i: (i, 0))
        scratch_shapes = []
        kernel = _ffn_resident_kernel
        semantics = ("parallel",)
        need = _resident_vmem_bytes(tm_eff, d_in_p, d_ff_p, x_item, w_item)
        bytes_accessed = 2 * M_pad * d_in_p * x_item + weight_bytes
    else:
        grid = (n_rows, d_ff_p // tf_eff)           # row axis first, reduction last
        in_specs = [
            pl.BlockSpec((tm_eff, d_in_p), lambda i, k: (i, 0)),              # x
            pl.BlockSpec((d_in_p, tf_eff), lambda i, k: (0, k)),              # W1 chunk
            pl.BlockSpec((1, tf_eff), lambda i, k: (0, k)),                   # b1 chunk
            pl.BlockSpec((tf_eff, d_in_p), lambda i, k: (k, 0)),              # W2 chunk
            pl.BlockSpec((1, d_in_p), lambda i, k: (0, 0),
                         pipeline_mode=resident_spec),                        # b2
        ]
        out_specs = pl.BlockSpec((tm_eff, d_in_p), lambda i, k: (i, 0))
        scratch_shapes = [pltpu.VMEM((tm_eff, d_in_p), jnp.float32)]
        kernel = _ffn_streamed_kernel
        semantics = ("parallel", "arbitrary")
        need = _streamed_vmem_bytes(tm_eff, tf_eff, d_in_p, x_item, w_item)
        bytes_accessed = 2 * M_pad * d_in_p * x_item + weight_bytes * n_rows

    vmem_limit = int(min(capacity, max(need + (8 << 20), 32 << 20)))
    cost = pl.CostEstimate(flops=flops, transcendentals=0,
                           bytes_accessed=int(bytes_accessed))

    out2d = pl.pallas_call(
        kernel,
        out_shape=jax.ShapeDtypeStruct((M_pad, d_in_p), out_dtype),
        grid_spec=pltpu.PrefetchScalarGridSpec(
            num_scalar_prefetch=0,
            grid=grid,
            in_specs=in_specs,
            out_specs=out_specs,
            scratch_shapes=scratch_shapes),
        compiler_params=pltpu.CompilerParams(
            dimension_semantics=semantics,
            vmem_limit_bytes=vmem_limit),
        cost_estimate=cost,
    )(x2d, w1_p, b1_p, w2_p, b2_p)

    return out2d[:M, :d_in].reshape(bz, len_q, d_in)


# ----------------------------- reference / demo ------------------------------


def _ffn_ref(x, w1, b1, w2, b2):
    h = jnp.maximum(jnp.dot(x, w1, precision="highest") + b1, 0.0)
    return jnp.dot(h, w2, precision="highest") + b2


def _init_params(key, d_in, d_ff, dtype=jnp.float32):
    """Deterministic synthetic params (uniform, torch-Linear-like scale)."""
    k1, k2, k3, k4 = jax.random.split(key, 4)
    bound1 = 1.0 / (d_in ** 0.5)
    bound2 = 1.0 / (d_ff ** 0.5)
    w1 = jax.random.uniform(k1, (d_in, d_ff), dtype, -bound1, bound1)
    b1 = jax.random.uniform(k2, (d_ff,), dtype, -bound1, bound1)
    w2 = jax.random.uniform(k3, (d_ff, d_in), dtype, -bound2, bound2)
    b2 = jax.random.uniform(k4, (d_in,), dtype, -bound2, bound2)
    return w1, b1, w2, b2


if __name__ == "__main__":
    bz, len_q, d_in, d_ff = 2, 8, 32, 64

    key = jax.random.PRNGKey(0)
    kx, kp = jax.random.split(key)
    x = jax.random.normal(kx, (bz, len_q, d_in), jnp.float32)
    w1, b1, w2, b2 = _init_params(kp, d_in, d_ff)
    ref = _ffn_ref(x, w1, b1, w2, b2)

    # 1) f32 resident-weight path (weights fit VMEM at this size).
    params = prepare_ffn_params(w1, b1, w2, b2)
    out = jax.block_until_ready(positionwise_feed_forward(x, *params))
    assert out.shape == (bz, len_q, d_in)
    assert jnp.allclose(out, ref, atol=1e-4, rtol=1e-4)

    # 2) streamed d_ff-reduction path (forced; tf=128 -> 2 reduction steps).
    w1s, b1s, w2s, b2s = _init_params(jax.random.PRNGKey(1), d_in, 256)
    ref_s = _ffn_ref(x, w1s, b1s, w2s, b2s)
    params_s = prepare_ffn_params(w1s, b1s, w2s, b2s)
    out_s = jax.block_until_ready(positionwise_feed_forward(
        x, *params_s, tf=128, force_streamed=True))
    assert out_s.shape == (bz, len_q, d_in)
    assert jnp.allclose(out_s, ref_s, atol=1e-4, rtol=1e-4)

    # 3) bf16-operand fast path (f32 activations in/out, bf16 weights, f32 acc).
    params_bf16 = prepare_ffn_params(w1, b1, w2, b2, compute_dtype=jnp.bfloat16)
    out_b = jax.block_until_ready(positionwise_feed_forward(x, *params_bf16))
    assert out_b.dtype == x.dtype and out_b.shape == (bz, len_q, d_in)
    assert jnp.allclose(out_b, ref, atol=1e-1, rtol=1e-1)

    print("KERNEL_OK")
</pallas_src>

<mosaic_0001>
module attributes {stable_mosaic.version = 11 : i64} {
  func.func @_ffn_resident_kernel(%arg0: i32, %arg1: memref<16x128xf32, #tpu.memory_space<vmem>>, %arg2: memref<128x128xf32, #tpu.memory_space<vmem>>, %arg3: memref<1x128xf32, #tpu.memory_space<vmem>>, %arg4: memref<128x128xf32, #tpu.memory_space<vmem>>, %arg5: memref<1x128xf32, #tpu.memory_space<vmem>>, %arg6: memref<16x128xf32, #tpu.memory_space<vmem>>) attributes {dimension_semantics = [#tpu.dimension_semantics<parallel>], iteration_bounds = array<i64: 1>, scalar_prefetch = 0 : i64, scratch_operands = 0 : i64, tpu.core_type = #tpu.core_type<tc>, window_params = [{transform_indices = @transform_0, window_bounds = array<i64: 16, 128>}, {pipeline_mode = #tpu.pipeline_mode<synchronous>, transform_indices = @transform_1, window_bounds = array<i64: 128, 128>}, {pipeline_mode = #tpu.pipeline_mode<synchronous>, transform_indices = @transform_2, window_bounds = array<i64: 1, 128>}, {pipeline_mode = #tpu.pipeline_mode<synchronous>, transform_indices = @transform_3, window_bounds = array<i64: 128, 128>}, {pipeline_mode = #tpu.pipeline_mode<synchronous>, transform_indices = @transform_4, window_bounds = array<i64: 1, 128>}, {transform_indices = @transform_5, window_bounds = array<i64: 16, 128>}]} {
    %c0 = arith.constant 0 : index
    %c0_0 = arith.constant 0 : index
    %0 = vector.load %arg1[%c0, %c0_0] : memref<16x128xf32, #tpu.memory_space<vmem>>, vector<16x128xf32>
    %c0_1 = arith.constant 0 : index
    %c0_2 = arith.constant 0 : index
    %1 = vector.load %arg2[%c0_1, %c0_2] : memref<128x128xf32, #tpu.memory_space<vmem>>, vector<128x128xf32>
    %cst = arith.constant dense<0.000000e+00> : vector<16x128xf32>
    %2 = tpu.matmul %0, %1, %cst {dimension_numbers = #tpu.dot_dimension_numbers<[1], [0], [0], [1], [0, 0, 1, 1], [], []>} : vector<16x128xf32>, vector<128x128xf32>, vector<16x128xf32> -> vector<16x128xf32>
    %c0_3 = arith.constant 0 : index
    %c0_4 = arith.constant 0 : index
    %3 = vector.load %arg3[%c0_3, %c0_4] : memref<1x128xf32, #tpu.memory_space<vmem>>, vector<1x128xf32>
    %4 = vector.broadcast %3 : vector<1x128xf32> to vector<16x128xf32>
    %5 = arith.addf %2, %4 : vector<16x128xf32>
    %cst_5 = arith.constant 0.000000e+00 : f32
    %6 = vector.broadcast %cst_5 : f32 to vector<16x128xf32>
    %7 = arith.maximumf %5, %6 : vector<16x128xf32>
    %c0_6 = arith.constant 0 : index
    %c0_7 = arith.constant 0 : index
    %8 = vector.load %arg4[%c0_6, %c0_7] : memref<128x128xf32, #tpu.memory_space<vmem>>, vector<128x128xf32>
    %cst_8 = arith.constant dense<0.000000e+00> : vector<16x128xf32>
    %9 = tpu.matmul %7, %8, %cst_8 {dimension_numbers = #tpu.dot_dimension_numbers<[1], [0], [0], [1], [0, 0, 1, 1], [], []>} : vector<16x128xf32>, vector<128x128xf32>, vector<16x128xf32> -> vector<16x128xf32>
    %c0_9 = arith.constant 0 : index
    %c0_10 = arith.constant 0 : index
    %10 = vector.load %arg5[%c0_9, %c0_10] : memref<1x128xf32, #tpu.memory_space<vmem>>, vector<1x128xf32>
    %11 = vector.broadcast %10 : vector<1x128xf32> to vector<16x128xf32>
    %12 = arith.addf %9, %11 : vector<16x128xf32>
    %c0_11 = arith.constant 0 : index
    %c0_12 = arith.constant 0 : index
    %13 = vector.load %arg6[%c0_11, %c0_12] : memref<16x128xf32, #tpu.memory_space<vmem>>, vector<16x128xf32>
    tpu.vector_store %arg6[%c0_11, %c0_12], %12 {strides = array<i32>} : memref<16x128xf32, #tpu.memory_space<vmem>>, vector<16x128xf32>,
    return
  }
  func.func @transform_0(%arg0: i32) -> (i32, i32) {
    %c0_i32 = arith.constant 0 : i32
    %c0_i32_0 = arith.constant 0 : i32
    return %arg0, %c0_i32 : i32, i32
  }
  func.func @transform_1(%arg0: i32) -> (i32, i32) {
    %c0_i32 = arith.constant 0 : i32
    %c0_i32_0 = arith.constant 0 : i32
    %c0_i32_1 = arith.constant 0 : i32
    return %c0_i32, %c0_i32_0 : i32, i32
  }
  func.func @transform_2(%arg0: i32) -> (i32, i32) {
    %c0_i32 = arith.constant 0 : i32
    %c0_i32_0 = arith.constant 0 : i32
    %c0_i32_1 = arith.constant 0 : i32
    return %c0_i32, %c0_i32_0 : i32, i32
  }
  func.func @transform_3(%arg0: i32) -> (i32, i32) {
    %c0_i32 = arith.constant 0 : i32
    %c0_i32_0 = arith.constant 0 : i32
    %c0_i32_1 = arith.constant 0 : i32
    return %c0_i32, %c0_i32_0 : i32, i32
  }
  func.func @transform_4(%arg0: i32) -> (i32, i32) {
    %c0_i32 = arith.constant 0 : i32
    %c0_i32_0 = arith.constant 0 : i32
    %c0_i32_1 = arith.constant 0 : i32
    return %c0_i32, %c0_i32_0 : i32, i32
  }
  func.func @transform_5(%arg0: i32) -> (i32, i32) {
    %c0_i32 = arith.constant 0 : i32
    %c0_i32_0 = arith.constant 0 : i32
    return %arg0, %c0_i32 : i32, i32
  }
}

</mosaic_0001>

<bundles_post_ra>
// kernel: positionwise_feed_forward.1
= control target key start
LH: loop header
LB: loop body
LE: loop exit
PB: predicated region body
PF: predicated region fallthrough
CT: control target
= control target key end

     0   :  { %10 = vsyncpa [#allocation3], 0  ;;  %s556_s0 = inlined_call_operand.vmem [shape: f32[16,128], index: 0, kind: input, shape index: {}]   ;;  %s557_s1 = inlined_call_operand.hbm [shape: f32[128,128], index: 1, kind: input, shape index: {}]   ;;  %s558_s2 = inlined_call_operand.vmem [shape: f32[1,128], index: 2, kind: input, shape index: {}]   ;;  %s559_s3 = inlined_call_operand.hbm [shape: f32[128,128], index: 3, kind: input, shape index: {}]   ;;  %s560_s4 = inlined_call_operand.vmem [shape: f32[1,128], index: 4, kind: input, shape index: {}]   ;;  %s561_s5 = inlined_call_operand.vmem [shape: f32[16,128], index: 5, kind: output, shape index: {}]  }
   0x1   :  { %11 = vsyncpa [#allocation5], 0  ;;  %s480_s18 = smov [#allocation2]   ;;  %s432_s22 = scalar_lea.hbm %s557_s1, 2048 }
   0x2   :  { %s19_s19 = sshll.u32 %s480_s18, 4  ;;  %p433_p0 = scmp.ne.s32.totalorder %s557_s1, %s432_s22  ;;  %s20_s19 = int_to_ptr.vmem [resolvable:$true] %s19_s19 }
   0x3   :  { %p436_p1 = scmp.lt.u32.totalorder %s432_s22, %s557_s1 }
   0x5   :  { %p438_p2 = pnand %p436_p1, %p433_p0 }
   0x7   :  { %441 = shalt.err (!%p438_p2)
}
   0x8   :  { %s442_s27 = scalar_lea.vmem %s20_s19, 2048  ;;  %p447_p4 = scmp.lt.s32.totalorder %s20_s19, %s20_s19 }
   0x9   :  { %p443_p3 = scmp.ne.s32.totalorder %s20_s19, %s442_s27  ;;  %p448_p5 = scmp.lt.s32.totalorder %s442_s27, %s442_s27 }
   0xb   :  { %p449_p6 = por %p448_p5, %p447_p4 }
   0xd   :  { %p450_p7 = pnand %p449_p6, %p443_p3 }
   0xf   :  { %453 = shalt.err (!%p450_p7)
}
  0x10   :  { %s481_s28 = smov 128   ;;  %s482_s29 = smov 8  }
  0x11   :  { %25 = dma.hbm_to_vmem [thread:$0]  %s557_s1, 2048, %s20_s19, [#allocation3], %s481_s28, %s481_s28, %s482_s29  }
  0x12   :  { %s483_s7 = smov [#allocation4]   ;;  %s454_s11 = scalar_lea.hbm %s559_s3, 2048 }
  0x13   :  { %s33_s8 = sshll.u32 %s483_s7, 4  ;;  %p455_p8 = scmp.ne.s32.totalorder %s559_s3, %s454_s11  ;;  %s34_s8 = int_to_ptr.vmem [resolvable:$true] %s33_s8 }
  0x14   :  { %p458_p9 = scmp.lt.u32.totalorder %s454_s11, %s559_s3 }
  0x16   :  { %p460_p10 = pnand %p458_p9, %p455_p8 }
  0x18   :  { %463 = shalt.err (!%p460_p10)
}
  0x19   :  { %s464_s16 = scalar_lea.vmem %s34_s8, 2048  ;;  %p469_p12 = scmp.lt.s32.totalorder %s34_s8, %s34_s8 }
  0x1a   :  { %p465_p11 = scmp.ne.s32.totalorder %s34_s8, %s464_s16  ;;  %p470_p13 = scmp.lt.s32.totalorder %s464_s16, %s464_s16 }
  0x1c   :  { %p471_p0 = por %p470_p13, %p469_p12 }
  0x1e   :  { %p472_p1 = pnand %p471_p0, %p465_p11 }
  0x20   :  { %475 = shalt.err (!%p472_p1)
}
  0x21   :  { %39 = dma.hbm_to_vmem [thread:$0]  %s559_s3, 2048, %s34_s8, [#allocation5], %s481_s28, %s481_s28, %s482_s29  }
  0x22   :  { %476 = dma.done.wait [#allocation3], 2048  }
  0x23   :  { %477 = vsyncadd [#allocation3], 4294965248 }
  0x24   :  { %478 = dma.done.wait [#allocation5], 2048  }
  0x25   :  { %479 = vsyncadd [#allocation5], 4294965248  ;;  %v50_v0 = vld [vmem:[#allocation2] sm:$0xff]  ;;  %v51_v1 = vld [vmem:[#allocation2 + $0x8] sm:$0xff] }
  0x26   :  { %v52_v2 = vld [vmem:[#allocation2 + $0x10] sm:$0xff]  ;;  %v364_v3 = vpack.c.bf16 %v51_v1, %v50_v0  ;;  %v53_v4 = vld [vmem:[#allocation2 + $0x18] sm:$0xff]  ;;  %v54_v6 = vld [vmem:[#allocation2 + $0x20] sm:$0xff] }
  0x27   :  { %v368_v5 = vpack.c.bf16 %v53_v4, %v52_v2  ;;  %v55_v7 = vld [vmem:[#allocation2 + $0x28] sm:$0xff]  ;;  %v56_v9 = vld [vmem:[#allocation2 + $0x30] sm:$0xff]  ;;  %v57_v10 = vld [vmem:[#allocation2 + $0x38] sm:$0xff] }
  0x28   :  { %365 = vmatprep.subr.bf16.mxu0 %v364_v3  ;;  %v372_v8 = vpack.c.bf16 %v55_v7, %v54_v6  ;;  %v48_v11 = vld [vmem:[%s556_s0] sm:$0xff]  ;;  %v151_v13 = vld [vmem:[#allocation4 + $0x8] sm:$0xff]  ;;  %v152_v14 = vld [vmem:[#allocation4 + $0x10] sm:$0xff]  ;;  %v376_v20 = vpack.c.bf16 %v57_v10, %v56_v9 }
  0x29   :  { %367 = vmatpush3.bf16.msra.mxu0 %v364_v3  ;;  %326 = vmatprep.mubr.f32.mxu0 %v48_v11  ;;  %v150_v12 = vld [vmem:[#allocation4] sm:$0xff]  ;;  %v153_v16 = vld [vmem:[#allocation4 + $0x18] sm:$0xff]  ;;  %v155_v19 = vld [vmem:[#allocation4 + $0x28] sm:$0xff] }
  0x2a   :  { %369 = vmatprep.subr.bf16.mxu0 %v368_v5  ;;  %v396_v15 = vpack.c.bf16 %v151_v13, %v150_v12  ;;  %v400_v17 = vpack.c.bf16 %v153_v16, %v152_v14  ;;  %v154_v18 = vld [vmem:[#allocation4 + $0x20] sm:$0xff]  ;;  %v59_v22 = vld [vmem:[#allocation2 + $0x48] sm:$0xff]  ;;  %v156_v24 = vld [vmem:[#allocation4 + $0x30] sm:$0xff] }
  0x2b   :  { %v58_v21 = vld [vmem:[#allocation2 + $0x40] sm:$0xff]  ;;  %v404_v23 = vpack.c.bf16 %v155_v19, %v154_v18  ;;  %v157_v25 = vld [vmem:[#allocation4 + $0x38] sm:$0xff]  ;;  %v60_v27 = vld [vmem:[#allocation2 + $0x50] sm:$0xff] }
  0x2c   :  { %397 = vmatprep.subr.bf16.mxu1 %v396_v15  ;;  %v380_v26 = vpack.c.bf16 %v59_v22, %v58_v21  ;;  %v61_v28 = vld [vmem:[#allocation2 + $0x58] sm:$0xff]  ;;  %v408_v29 = vpack.c.bf16 %v157_v25, %v156_v24  ;;  %v158_v30 = vld [vmem:[#allocation4 + $0x40] sm:$0xff]  ;;  %v159_v31 = vld [vmem:[#allocation4 + $0x48] sm:$0xff] }
  0x2d   :  { %371 = vmatpush3.bf16.msra.mxu0 %v368_v5  ;;  %399 = vmatpush3.bf16.msra.mxu1 %v396_v15  ;;  %v384_v32 = vpack.c.bf16 %v61_v28, %v60_v27  ;;  %v62_v33 = vld [vmem:[#allocation2 + $0x60] sm:$0xff]  ;;  %v63_v34 = vld [vmem:[#allocation2 + $0x68] sm:$0xff]  ;;  %v412_v35 = vpack.c.bf16 %v159_v31, %v158_v30  ;;  %v160_v36 = vld [vmem:[#allocation4 + $0x50] sm:$0xff] }
  0x2e   :  { %373 = vmatprep.subr.bf16.mxu0 %v372_v8  ;;  %401 = vmatprep.subr.bf16.mxu1 %v400_v17  ;;  %v161_v37 = vld [vmem:[#allocation4 + $0x58] sm:$0xff]  ;;  %v388_v38 = vpack.c.bf16 %v63_v34, %v62_v33  ;;  %v64_v39 = vld [vmem:[#allocation2 + $0x70] sm:$0xff]  ;;  %v162_v42 = vld [vmem:[#allocation4 + $0x60] sm:$0xff] }
  0x2f   :  { %v65_v40 = vld [vmem:[#allocation2 + $0x78] sm:$0xff]  ;;  %v416_v41 = vpack.c.bf16 %v161_v37, %v160_v36  ;;  %v163_v43 = vld [vmem:[#allocation4 + $0x68] sm:$0xff]  ;;  %v164_v47 = vld [vmem:[#allocation4 + $0x70] sm:$0xff] }
  0x30   :  { %v392_v44 = vpack.c.bf16 %v65_v40, %v64_v39  ;;  %v420_v45 = vpack.c.bf16 %v163_v43, %v162_v42  ;;  %v49_v46 = vld [vmem:[%s556_s0 + $0x8] sm:$0xff]  ;;  %v165_v48 = vld [vmem:[#allocation4 + $0x78] sm:$0xff]  ;;  %v256_v50 = vld [vmem:[%s558_s2] ss:$0 sm:$0xff] }
  0x31   :  { %375 = vmatpush3.bf16.msra.mxu0 %v372_v8  ;;  %403 = vmatpush3.bf16.msra.mxu1 %v400_v17  ;;  %v424_v49 = vpack.c.bf16 %v165_v48, %v164_v47  ;;  %v257_v57 = vld [vmem:[%s560_s4] ss:$0 sm:$0xff] }
  0x32   :  { %377 = vmatprep.subr.bf16.mxu0 %v376_v20  ;;  %405 = vmatprep.subr.bf16.mxu1 %v404_v23 }
  0x35   :  { %379 = vmatpush3.bf16.msra.mxu0 %v376_v20  ;;  %407 = vmatpush3.bf16.msra.mxu1 %v404_v23 }
  0x36   :  { %381 = vmatprep.subr.bf16.mxu0 %v380_v26  ;;  %409 = vmatprep.subr.bf16.mxu1 %v408_v29 }
  0x39   :  { %383 = vmatpush3.bf16.msra.mxu0 %v380_v26  ;;  %411 = vmatpush3.bf16.msra.mxu1 %v408_v29 }
  0x3a   :  { %385 = vmatprep.subr.bf16.mxu0 %v384_v32  ;;  %413 = vmatprep.subr.bf16.mxu1 %v412_v35 }
  0x3d   :  { %387 = vmatpush3.bf16.msra.mxu0 %v384_v32  ;;  %415 = vmatpush3.bf16.msra.mxu1 %v412_v35 }
  0x3e   :  { %389 = vmatprep.subr.bf16.mxu0 %v388_v38  ;;  %417 = vmatprep.subr.bf16.mxu1 %v416_v41 }
  0x41   :  { %391 = vmatpush3.bf16.msra.mxu0 %v388_v38  ;;  %419 = vmatpush3.bf16.msra.mxu1 %v416_v41 }
  0x42   :  { %393 = vmatprep.subr.bf16.mxu0 %v392_v44  ;;  %421 = vmatprep.subr.bf16.mxu1 %v420_v45 }
  0x45   :  { %395 = vmatpush3.bf16.msra.mxu0 %v392_v44  ;;  %423 = vmatpush3.bf16.msra.mxu1 %v420_v45 }
  0x46   :  { %425 = vmatprep.subr.bf16.mxu1 %v424_v49 }
  0x48   :  { %327 = vmatmul.mubr.f32.vlgmr.msra.gmra.mrb[0].mxu0 %v49_v46 }
  0x49   :  { %427 = vmatpush3.bf16.msra.mxu1 %v424_v49 }
 0x11b   :  { %v328_v51 = vpop.f32.mrb[0].mxu0 }
 0x11c   :  { %v145_v52 = vadd.f32 %v328_v51, %v256_v50  ;;  %v139_v53 = vpop.f32.mrb[1].mxu0 }
 0x11d   :  { %v140_v54 = vadd.f32 %v256_v50, %v139_v53 }
 0x11e   :  { %v149_v56 = vmax.f32 %v145_v52, 0.0 }
 0x11f   :  { %v148_v55 = vmax.f32 %v140_v54, 0.0 }
 0x121   :  { %361 = vmatprep.mubr.f32.mxu1 %v148_v55 }
 0x122   :  { %362 = vmatmul.mubr.f32.vlgmr.msra.gmra.mrb[0].mxu1 %v149_v56 }
 0x1f5   :  { %v363_v58 = vpop.f32.mrb[0].mxu1 }
 0x1f6   :  { %v245_v59 = vadd.f32 %v363_v58, %v257_v57  ;;  %v239_v60 = vpop.f32.mrb[1].mxu1 }
 0x1f7   :  { %v240_v61 = vadd.f32 %v257_v57, %v239_v60 }
 0x1f8   :  { %249 = vst [vmem:[%s561_s5 + $0x8] sm:$0xff] %v245_v59 }
 0x1f9   :  { %248 = vst [vmem:[%s561_s5] sm:$0xff] %v240_v61 }
 0x1fa   :  { %254 = vsyncpa [#allocation3], 1 }
 0x1fb   :  { %255 = vsyncpa [#allocation5], 1 }

</bundles_post_ra>
